<compile_context>
chip_gen: v6e
topology: v6e:2x2x1
jax: 0.10.0
libtpu: 0.0.40
codegen_flags: <defaults>
</compile_context>

<pallas_src>
import functools

import numpy as np
import jax
import jax.numpy as jnp
from jax import lax
from jax.experimental import pallas as pl
from jax.experimental.pallas import tpu as pltpu


def _composite_kernel(T_threshold, tri_ref, feat_ref, out_ref, ws_ref):
    """One ray block: feat_ref (7, MAX, R), out_ref (8, R), ws_ref (MAX, R)."""
    sig = feat_ref[0]      # (MAX, R)
    dlt = feat_ref[1]
    tval = feat_ref[2]
    cr = feat_ref[3]
    cg = feat_ref[4]
    cb = feat_ref[5]
    msk = feat_ref[6]      # 1.0 for valid samples, 0.0 for padding

    # sigma * delta, zeroed for invalid/padded samples.
    sd = sig * dlt * msk

    # Exclusive prefix sum along the sample (sublane) axis via a strictly
    # lower-triangular matmul on the MXU:
    #   T_i = exp(-sum_{j<i} sigma_j * delta_j)
    # identical to the sequential T *= (1 - a) recurrence of the Taichi kernel.
    excl = jnp.dot(tri_ref[...], sd,
                   preferred_element_type=jnp.float32,
                   precision=lax.Precision.HIGHEST)
    T = jnp.exp(-excl)

    alive = jnp.logical_and(T > T_threshold, msk > 0.0)   # early termination
    a = 1.0 - jnp.exp(-sd)
    w = jnp.where(alive, a * T, 0.0)                      # (MAX, R)

    ws_ref[...] = w                                       # lane-dense store

    opacity = jnp.sum(w, axis=0, keepdims=True)           # (1, R)
    depth = jnp.sum(w * tval, axis=0, keepdims=True)
    rr = jnp.sum(w * cr, axis=0, keepdims=True)
    gg = jnp.sum(w * cg, axis=0, keepdims=True)
    bb = jnp.sum(w * cb, axis=0, keepdims=True)
    total = jnp.sum(alive.astype(jnp.float32), axis=0, keepdims=True)

    # Pack per-ray stats into an (8, R) lane-dense slab:
    #   row 0: opacity, 1: depth, 2-4: rgb, 5: sample count, 6-7: zero.
    srow = lax.broadcasted_iota(jnp.int32, (8, out_ref.shape[1]), 0)
    out_ref[...] = (jnp.where(srow == 0, opacity, 0.0)
                    + jnp.where(srow == 1, depth, 0.0)
                    + jnp.where(srow == 2, rr, 0.0)
                    + jnp.where(srow == 3, gg, 0.0)
                    + jnp.where(srow == 4, bb, 0.0)
                    + jnp.where(srow == 5, total, 0.0))


def volume_render_composite(sigmas, rgbs, deltas, ts, rays_a, T_threshold,
                            max_samples=64, ray_block=128):
    """Forward pass of VolumeRendererTaichi.

    Returns (total_samples, opacity, depth, rgb, ws) like the torch module.
    NOTE: the original module returns a never-synced zero buffer for `ws`
    (apparent bug); here we return the actually-computed per-sample weights.
    int64 buffers of the torch module are represented as int32.
    ray_block=128 fills the lanes / v5e MXU; use 256 to fill v6e/v7x's MXU.
    If rays_a contains duplicate ray_idx, last write wins (original races too).
    """
    f32 = jnp.float32
    S = sigmas.shape[0]
    n_rays = rays_a.shape[0]

    rays_i = rays_a.astype(jnp.int32)
    ray_idx = rays_i[:, 0]
    start = rays_i[:, 1]
    n_samp = rays_i[:, 2]

    n_blocks = pl.cdiv(n_rays, ray_block)
    n_rays_pad = n_blocks * ray_block

    # ---- densify ragged flat samples -> (n_blocks, 7, MAX, R) (layout glue) --
    offs = jnp.arange(max_samples, dtype=jnp.int32)
    idx = start[:, None] + offs[None, :]                      # (n_rays, MAX)
    valid = offs[None, :] < n_samp[:, None]
    safe = jnp.minimum(jnp.where(valid, idx, 0), S - 1)
    flat = safe.reshape(-1)

    sig_d = jnp.take(sigmas.astype(f32), flat).reshape(n_rays, max_samples)
    del_d = jnp.take(deltas.astype(f32), flat).reshape(n_rays, max_samples)
    t_d = jnp.take(ts.astype(f32), flat).reshape(n_rays, max_samples)
    rgb_d = jnp.take(rgbs.astype(f32), flat, axis=0).reshape(
        n_rays, max_samples, 3)

    feat = jnp.stack([sig_d, del_d, t_d,
                      rgb_d[..., 0], rgb_d[..., 1], rgb_d[..., 2],
                      valid.astype(f32)], axis=1)             # (n_rays, 7, MAX)
    feat = jnp.pad(feat, ((0, n_rays_pad - n_rays), (0, 0), (0, 0)))
    # block-major, rays on the lane axis: (n_blocks, 7, MAX, R)
    feat = feat.reshape(n_blocks, ray_block, 7, max_samples).transpose(0, 2, 3, 1)

    # Strictly-lower-triangular prefix-sum operator (loop-invariant; the
    # constant index_map means it is DMA'd into VMEM only once).
    tri = (jnp.arange(max_samples)[None, :]
           < jnp.arange(max_samples)[:, None]).astype(f32)

    kernel = functools.partial(_composite_kernel, float(T_threshold))

    packed, ws_dense = pl.pallas_call(
        kernel,
        grid=(n_blocks,),
        in_specs=[
            pl.BlockSpec((max_samples, max_samples), lambda b: (0, 0)),
            pl.BlockSpec((None, 7, max_samples, ray_block),
                         lambda b: (b, 0, 0, 0)),
        ],
        out_specs=[
            pl.BlockSpec((None, 8, ray_block), lambda b: (b, 0, 0)),
            pl.BlockSpec((None, max_samples, ray_block), lambda b: (b, 0, 0)),
        ],
        out_shape=(
            jax.ShapeDtypeStruct((n_blocks, 8, ray_block), f32),
            jax.ShapeDtypeStruct((n_blocks, max_samples, ray_block), f32),
        ),
        compiler_params=pltpu.CompilerParams(
            dimension_semantics=("parallel",)),
    )(tri, feat)

    # ---- decode per-ray stats (permute by ray_idx in the wrapper) -----------
    per_n = packed.transpose(0, 2, 1).reshape(n_rays_pad, 8)[:n_rays]
    opacity = jnp.zeros((n_rays,), f32).at[ray_idx].set(per_n[:, 0])
    depth = jnp.zeros((n_rays,), f32).at[ray_idx].set(per_n[:, 1])
    rgb = jnp.zeros((n_rays, 3), f32).at[ray_idx].set(per_n[:, 2:5])
    total_samples = per_n[:, 5].astype(jnp.int32).sum()

    # ---- scatter dense per-ray weights back to the flat (S,) layout ---------
    ws_per_n = ws_dense.transpose(0, 2, 1).reshape(
        n_rays_pad, max_samples)[:n_rays]
    flat_idx = jnp.where(valid, idx, S)   # out-of-bounds index -> dropped
    ws = jnp.zeros((S,), f32).at[flat_idx.reshape(-1)].set(
        ws_per_n.reshape(-1), mode="drop")

    return total_samples, opacity, depth, rgb, ws


def _reference(sigmas, rgbs, deltas, ts, rays_a, thr):
    """Pure-python port of composite_train_fw (float64 reference)."""
    sigmas = np.asarray(sigmas, np.float64)
    rgbs = np.asarray(rgbs, np.float64)
    deltas = np.asarray(deltas, np.float64)
    ts = np.asarray(ts, np.float64)
    rays_a = np.asarray(rays_a)
    n_rays = rays_a.shape[0]
    S = sigmas.shape[0]
    opacity = np.zeros(n_rays)
    depth = np.zeros(n_rays)
    rgb = np.zeros((n_rays, 3))
    total = np.zeros(n_rays, np.int64)
    ws = np.zeros(S)
    for n in range(n_rays):
        ray_idx, start, N = int(rays_a[n, 0]), int(rays_a[n, 1]), int(rays_a[n, 2])
        T = 1.0
        for i in range(N):
            s = start + i
            if T > thr:
                a = 1.0 - np.exp(-sigmas[s] * deltas[s])
                w = a * T
                rgb[ray_idx] += w * rgbs[s]
                depth[ray_idx] += w * ts[s]
                opacity[ray_idx] += w
                ws[s] = w
                T = T * (1.0 - a)
                total[ray_idx] += 1
            else:
                T = 0.0
    return total.sum(), opacity, depth, rgb, ws


if __name__ == "__main__":
    n_rays = 8
    max_samples = 64
    # Deterministic ragged ray layout: (ray_idx, start_idx, N_samples)
    n_samples = jnp.array([40, 8, 64, 23, 17, 50, 31, 12], dtype=jnp.int32)
    starts = jnp.concatenate([jnp.zeros((1,), jnp.int32),
                              jnp.cumsum(n_samples)[:-1].astype(jnp.int32)])
    S = int(n_samples.sum())  # 245
    rays_a = jnp.stack([jnp.arange(n_rays, dtype=jnp.int32), starts, n_samples],
                       axis=1)

    key = jax.random.PRNGKey(0)
    k2, k3, k4, k5 = jax.random.split(key, 4)
    sigmas = jax.random.uniform(k2, (S,), dtype=jnp.float32, minval=0.0, maxval=5.0)
    rgbs = jax.random.uniform(k3, (S, 3), dtype=jnp.float32)
    deltas = jax.random.uniform(k4, (S,), dtype=jnp.float32, minval=0.01, maxval=0.2)
    ts = jax.random.uniform(k5, (S,), dtype=jnp.float32, minval=0.1, maxval=5.0)
    T_threshold = 1e-2

    out = volume_render_composite(sigmas, rgbs, deltas, ts, rays_a, T_threshold,
                                  max_samples=max_samples)
    out = jax.block_until_ready(out)
    total, opacity, depth, rgb, ws = out

    ref_total, ref_opacity, ref_depth, ref_rgb, ref_ws = _reference(
        sigmas, rgbs, deltas, ts, rays_a, T_threshold)

    assert int(total) == int(ref_total), (int(total), int(ref_total))
    np.testing.assert_allclose(np.asarray(opacity), ref_opacity, rtol=1e-4, atol=1e-4)
    np.testing.assert_allclose(np.asarray(depth), ref_depth, rtol=1e-4, atol=1e-4)
    np.testing.assert_allclose(np.asarray(rgb), ref_rgb, rtol=1e-4, atol=1e-4)
    np.testing.assert_allclose(np.asarray(ws), ref_ws, rtol=1e-4, atol=1e-4)

    print("KERNEL_OK")
</pallas_src>

<mosaic_0001>
module attributes {stable_mosaic.version = 11 : i64} {
  func.func @_composite_kernel(%arg0: i32, %arg1: memref<64x64xf32, #tpu.memory_space<vmem>>, %arg2: memref<1x7x64x128xf32, #tpu.memory_space<vmem>>, %arg3: memref<1x8x128xf32, #tpu.memory_space<vmem>>, %arg4: memref<1x64x128xf32, #tpu.memory_space<vmem>>) attributes {dimension_semantics = [#tpu.dimension_semantics<parallel>], iteration_bounds = array<i64: 1>, scalar_prefetch = 0 : i64, scratch_operands = 0 : i64, tpu.core_type = #tpu.core_type<tc>, window_params = [{pipeline_mode = #tpu.pipeline_mode<synchronous>, transform_indices = @transform_0, window_bounds = array<i64: 64, 64>}, {transform_indices = @transform_1, window_bounds = array<i64: 1, 7, 64, 128>}, {transform_indices = @transform_2, window_bounds = array<i64: 1, 8, 128>}, {transform_indices = @transform_3, window_bounds = array<i64: 1, 64, 128>}]} {
    %c0 = arith.constant 0 : index
    %c0_0 = arith.constant 0 : index
    %c0_1 = arith.constant 0 : index
    %c0_2 = arith.constant 0 : index
    %0 = vector.load %arg2[%c0, %c0_0, %c0_1, %c0_2] : memref<1x7x64x128xf32, #tpu.memory_space<vmem>>, vector<1x1x64x128xf32>
    %1 = vector.shape_cast %0 : vector<1x1x64x128xf32> to vector<64x128xf32>
    %c0_3 = arith.constant 0 : index
    %c1 = arith.constant 1 : index
    %c0_4 = arith.constant 0 : index
    %c0_5 = arith.constant 0 : index
    %2 = vector.load %arg2[%c0_3, %c1, %c0_4, %c0_5] : memref<1x7x64x128xf32, #tpu.memory_space<vmem>>, vector<1x1x64x128xf32>
    %3 = vector.shape_cast %2 : vector<1x1x64x128xf32> to vector<64x128xf32>
    %c0_6 = arith.constant 0 : index
    %c2 = arith.constant 2 : index
    %c0_7 = arith.constant 0 : index
    %c0_8 = arith.constant 0 : index
    %4 = vector.load %arg2[%c0_6, %c2, %c0_7, %c0_8] : memref<1x7x64x128xf32, #tpu.memory_space<vmem>>, vector<1x1x64x128xf32>
    %5 = vector.shape_cast %4 : vector<1x1x64x128xf32> to vector<64x128xf32>
    %c0_9 = arith.constant 0 : index
    %c3 = arith.constant 3 : index
    %c0_10 = arith.constant 0 : index
    %c0_11 = arith.constant 0 : index
    %6 = vector.load %arg2[%c0_9, %c3, %c0_10, %c0_11] : memref<1x7x64x128xf32, #tpu.memory_space<vmem>>, vector<1x1x64x128xf32>
    %7 = vector.shape_cast %6 : vector<1x1x64x128xf32> to vector<64x128xf32>
    %c0_12 = arith.constant 0 : index
    %c4 = arith.constant 4 : index
    %c0_13 = arith.constant 0 : index
    %c0_14 = arith.constant 0 : index
    %8 = vector.load %arg2[%c0_12, %c4, %c0_13, %c0_14] : memref<1x7x64x128xf32, #tpu.memory_space<vmem>>, vector<1x1x64x128xf32>
    %9 = vector.shape_cast %8 : vector<1x1x64x128xf32> to vector<64x128xf32>
    %c0_15 = arith.constant 0 : index
    %c5 = arith.constant 5 : index
    %c0_16 = arith.constant 0 : index
    %c0_17 = arith.constant 0 : index
    %10 = vector.load %arg2[%c0_15, %c5, %c0_16, %c0_17] : memref<1x7x64x128xf32, #tpu.memory_space<vmem>>, vector<1x1x64x128xf32>
    %11 = vector.shape_cast %10 : vector<1x1x64x128xf32> to vector<64x128xf32>
    %c0_18 = arith.constant 0 : index
    %c6 = arith.constant 6 : index
    %c0_19 = arith.constant 0 : index
    %c0_20 = arith.constant 0 : index
    %12 = vector.load %arg2[%c0_18, %c6, %c0_19, %c0_20] : memref<1x7x64x128xf32, #tpu.memory_space<vmem>>, vector<1x1x64x128xf32>
    %13 = vector.shape_cast %12 : vector<1x1x64x128xf32> to vector<64x128xf32>
    %14 = arith.mulf %1, %3 : vector<64x128xf32>
    %15 = arith.mulf %14, %13 : vector<64x128xf32>
    %c0_21 = arith.constant 0 : index
    %c0_22 = arith.constant 0 : index
    %16 = vector.load %arg1[%c0_21, %c0_22] : memref<64x64xf32, #tpu.memory_space<vmem>>, vector<64x64xf32>
    %cst = arith.constant dense<0.000000e+00> : vector<64x128xf32>
    %17 = tpu.matmul %16, %15, %cst {dimension_numbers = #tpu.dot_dimension_numbers<[1], [0], [0], [1], [0, 0, 1, 1], [], []>, precision = #tpu.contract_precision<fp32>} : vector<64x64xf32>, vector<64x128xf32>, vector<64x128xf32> -> vector<64x128xf32>
    %cst_23 = arith.constant 0.000000e+00 : f32
    %18 = vector.broadcast %cst_23 : f32 to vector<64x128xf32>
    %19 = arith.subf %18, %17 : vector<64x128xf32>
    %20 = math.exp %19 : vector<64x128xf32>
    %cst_24 = arith.constant 0.00999999977 : f32
    %21 = vector.broadcast %cst_24 : f32 to vector<64x128xf32>
    %22 = arith.cmpf ogt, %20, %21 : vector<64x128xf32>
    %cst_25 = arith.constant 0.000000e+00 : f32
    %23 = vector.broadcast %cst_25 : f32 to vector<64x128xf32>
    %24 = arith.cmpf ogt, %13, %23 : vector<64x128xf32>
    %25 = arith.andi %22, %24 : vector<64x128xi1>
    %cst_26 = arith.constant 0.000000e+00 : f32
    %26 = vector.broadcast %cst_26 : f32 to vector<64x128xf32>
    %27 = arith.subf %26, %15 : vector<64x128xf32>
    %28 = math.exp %27 : vector<64x128xf32>
    %cst_27 = arith.constant 1.000000e+00 : f32
    %29 = vector.broadcast %cst_27 : f32 to vector<64x128xf32>
    %30 = arith.subf %29, %28 : vector<64x128xf32>
    %31 = arith.mulf %30, %20 : vector<64x128xf32>
    %cst_28 = arith.constant 0.000000e+00 : f32
    %32 = vector.broadcast %cst_28 : f32 to vector<64x128xf32>
    %33 = arith.select %25, %31, %32 : vector<64x128xi1>, vector<64x128xf32>
    %c0_29 = arith.constant 0 : index
    %c0_30 = arith.constant 0 : index
    %c0_31 = arith.constant 0 : index
    %34 = vector.load %arg4[%c0_29, %c0_30, %c0_31] : memref<1x64x128xf32, #tpu.memory_space<vmem>>, vector<1x64x128xf32>
    %35 = vector.shape_cast %34 : vector<1x64x128xf32> to vector<64x128xf32>
    %36 = vector.shape_cast %33 : vector<64x128xf32> to vector<1x64x128xf32>
    tpu.vector_store %arg4[%c0_29, %c0_30, %c0_31], %36 {strides = array<i32>} : memref<1x64x128xf32, #tpu.memory_space<vmem>>, vector<1x64x128xf32>,
    %cst_32 = arith.constant dense<0.000000e+00> : vector<128xf32>
    %37 = vector.multi_reduction <add>, %33, %cst_32 [0] : vector<64x128xf32> to vector<128xf32>
    %38 = vector.shape_cast %37 : vector<128xf32> to vector<1x128xf32>
    %39 = arith.mulf %33, %5 : vector<64x128xf32>
    %cst_33 = arith.constant dense<0.000000e+00> : vector<128xf32>
    %40 = vector.multi_reduction <add>, %39, %cst_33 [0] : vector<64x128xf32> to vector<128xf32>
    %41 = vector.shape_cast %40 : vector<128xf32> to vector<1x128xf32>
    %42 = arith.mulf %33, %7 : vector<64x128xf32>
    %cst_34 = arith.constant dense<0.000000e+00> : vector<128xf32>
    %43 = vector.multi_reduction <add>, %42, %cst_34 [0] : vector<64x128xf32> to vector<128xf32>
    %44 = vector.shape_cast %43 : vector<128xf32> to vector<1x128xf32>
    %45 = arith.mulf %33, %9 : vector<64x128xf32>
    %cst_35 = arith.constant dense<0.000000e+00> : vector<128xf32>
    %46 = vector.multi_reduction <add>, %45, %cst_35 [0] : vector<64x128xf32> to vector<128xf32>
    %47 = vector.shape_cast %46 : vector<128xf32> to vector<1x128xf32>
    %48 = arith.mulf %33, %11 : vector<64x128xf32>
    %cst_36 = arith.constant dense<0.000000e+00> : vector<128xf32>
    %49 = vector.multi_reduction <add>, %48, %cst_36 [0] : vector<64x128xf32> to vector<128xf32>
    %50 = vector.shape_cast %49 : vector<128xf32> to vector<1x128xf32>
    %51 = arith.extui %25 : vector<64x128xi1> to vector<64x128xi32>
    %52 = arith.sitofp %51 : vector<64x128xi32> to vector<64x128xf32>
    %cst_37 = arith.constant dense<0.000000e+00> : vector<128xf32>
    %53 = vector.multi_reduction <add>, %52, %cst_37 [0] : vector<64x128xf32> to vector<128xf32>
    %54 = vector.shape_cast %53 : vector<128xf32> to vector<1x128xf32>
    %55 = tpu.iota {dimensions = array<i32: 0>} : vector<8x128xi32>
    %c0_i32 = arith.constant 0 : i32
    %56 = vector.broadcast %c0_i32 : i32 to vector<8x128xi32>
    %57 = arith.cmpi eq, %55, %56 : vector<8x128xi32>
    %cst_38 = arith.constant 0.000000e+00 : f32
    %58 = vector.shape_cast %38 : vector<1x128xf32> to vector<1x128xf32>
    %59 = vector.broadcast %58 : vector<1x128xf32> to vector<8x128xf32>
    %60 = vector.broadcast %cst_38 : f32 to vector<8x128xf32>
    %61 = arith.select %57, %59, %60 : vector<8x128xi1>, vector<8x128xf32>
    %c1_i32 = arith.constant 1 : i32
    %62 = vector.broadcast %c1_i32 : i32 to vector<8x128xi32>
    %63 = arith.cmpi eq, %55, %62 : vector<8x128xi32>
    %cst_39 = arith.constant 0.000000e+00 : f32
    %64 = vector.shape_cast %41 : vector<1x128xf32> to vector<1x128xf32>
    %65 = vector.broadcast %64 : vector<1x128xf32> to vector<8x128xf32>
    %66 = vector.broadcast %cst_39 : f32 to vector<8x128xf32>
    %67 = arith.select %63, %65, %66 : vector<8x128xi1>, vector<8x128xf32>
    %68 = arith.addf %61, %67 : vector<8x128xf32>
    %c2_i32 = arith.constant 2 : i32
    %69 = vector.broadcast %c2_i32 : i32 to vector<8x128xi32>
    %70 = arith.cmpi eq, %55, %69 : vector<8x128xi32>
    %cst_40 = arith.constant 0.000000e+00 : f32
    %71 = vector.shape_cast %44 : vector<1x128xf32> to vector<1x128xf32>
    %72 = vector.broadcast %71 : vector<1x128xf32> to vector<8x128xf32>
    %73 = vector.broadcast %cst_40 : f32 to vector<8x128xf32>
    %74 = arith.select %70, %72, %73 : vector<8x128xi1>, vector<8x128xf32>
    %75 = arith.addf %68, %74 : vector<8x128xf32>
    %c3_i32 = arith.constant 3 : i32
    %76 = vector.broadcast %c3_i32 : i32 to vector<8x128xi32>
    %77 = arith.cmpi eq, %55, %76 : vector<8x128xi32>
    %cst_41 = arith.constant 0.000000e+00 : f32
    %78 = vector.shape_cast %47 : vector<1x128xf32> to vector<1x128xf32>
    %79 = vector.broadcast %78 : vector<1x128xf32> to vector<8x128xf32>
    %80 = vector.broadcast %cst_41 : f32 to vector<8x128xf32>
    %81 = arith.select %77, %79, %80 : vector<8x128xi1>, vector<8x128xf32>
    %82 = arith.addf %75, %81 : vector<8x128xf32>
    %c4_i32 = arith.constant 4 : i32
    %83 = vector.broadcast %c4_i32 : i32 to vector<8x128xi32>
    %84 = arith.cmpi eq, %55, %83 : vector<8x128xi32>
    %cst_42 = arith.constant 0.000000e+00 : f32
    %85 = vector.shape_cast %50 : vector<1x128xf32> to vector<1x128xf32>
    %86 = vector.broadcast %85 : vector<1x128xf32> to vector<8x128xf32>
    %87 = vector.broadcast %cst_42 : f32 to vector<8x128xf32>
    %88 = arith.select %84, %86, %87 : vector<8x128xi1>, vector<8x128xf32>
    %89 = arith.addf %82, %88 : vector<8x128xf32>
    %c5_i32 = arith.constant 5 : i32
    %90 = vector.broadcast %c5_i32 : i32 to vector<8x128xi32>
    %91 = arith.cmpi eq, %55, %90 : vector<8x128xi32>
    %cst_43 = arith.constant 0.000000e+00 : f32
    %92 = vector.shape_cast %54 : vector<1x128xf32> to vector<1x128xf32>
    %93 = vector.broadcast %92 : vector<1x128xf32> to vector<8x128xf32>
    %94 = vector.broadcast %cst_43 : f32 to vector<8x128xf32>
    %95 = arith.select %91, %93, %94 : vector<8x128xi1>, vector<8x128xf32>
    %96 = arith.addf %89, %95 : vector<8x128xf32>
    %c0_44 = arith.constant 0 : index
    %c0_45 = arith.constant 0 : index
    %c0_46 = arith.constant 0 : index
    %97 = vector.load %arg3[%c0_44, %c0_45, %c0_46] : memref<1x8x128xf32, #tpu.memory_space<vmem>>, vector<1x8x128xf32>
    %98 = vector.shape_cast %97 : vector<1x8x128xf32> to vector<8x128xf32>
    %99 = vector.shape_cast %96 : vector<8x128xf32> to vector<1x8x128xf32>
    tpu.vector_store %arg3[%c0_44, %c0_45, %c0_46], %99 {strides = array<i32>} : memref<1x8x128xf32, #tpu.memory_space<vmem>>, vector<1x8x128xf32>,
    return
  }
  func.func @transform_0(%arg0: i32) -> (i32, i32) {
    %c0_i32 = arith.constant 0 : i32
    %c0_i32_0 = arith.constant 0 : i32
    %c0_i32_1 = arith.constant 0 : i32
    return %c0_i32, %c0_i32_0 : i32, i32
  }
  func.func @transform_1(%arg0: i32) -> (i32, i32, i32, i32) {
    %c0_i32 = arith.constant 0 : i32
    %c0_i32_0 = arith.constant 0 : i32
    %c0_i32_1 = arith.constant 0 : i32
    %c0_i32_2 = arith.constant 0 : i32
    return %arg0, %c0_i32, %c0_i32_0, %c0_i32_1 : i32, i32, i32, i32
  }
  func.func @transform_2(%arg0: i32) -> (i32, i32, i32) {
    %c0_i32 = arith.constant 0 : i32
    %c0_i32_0 = arith.constant 0 : i32
    %c0_i32_1 = arith.constant 0 : i32
    return %arg0, %c0_i32, %c0_i32_0 : i32, i32, i32
  }
  func.func @transform_3(%arg0: i32) -> (i32, i32, i32) {
    %c0_i32 = arith.constant 0 : i32
    %c0_i32_0 = arith.constant 0 : i32
    %c0_i32_1 = arith.constant 0 : i32
    return %arg0, %c0_i32, %c0_i32_0 : i32, i32, i32
  }
}

</mosaic_0001>

<bundles_post_ra>
// kernel: tpu_custom_call.1
= control target key start
LH: loop header
LB: loop body
LE: loop exit
PB: predicated region body
PF: predicated region fallthrough
CT: control target
= control target key end

     0   :  { %9 = vsyncpa [#allocation3], 0  ;;  %s2265_s0 = inlined_call_operand.hbm [shape: f32[64,64], index: 0, kind: input, shape index: {}]   ;;  %s2266_s1 = inlined_call_operand.hbm [shape: f32[1,7,64,128], index: 1, kind: input, shape index: {}]   ;;  %s2267_s2 = inlined_call_operand.hbm [shape: f32[1,8,128], index: 2, kind: output, shape index: {0}]   ;;  %s2268_s3 = inlined_call_operand.hbm [shape: f32[1,64,128], index: 3, kind: output, shape index: {1}]  }
   0x1   :  { %10 = vsyncpa [#allocation6], 0 }
   0x2   :  { %11 = vsyncpa [#allocation4], 0 }
   0x3   :  { %12 = vsyncpa [#allocation9], 0  ;;  %s1673_s12 = smov [#allocation2]  }
   0x4   :  { %s18_s13 = sshll.u32 %s1673_s12, 4  ;;  %s19_s13 = int_to_ptr.vmem [resolvable:$true] %s18_s13 }
   0x5   :  { %s1593_s14 = scalar_lea.vmem %s19_s13, 1024  ;;  %p1598_p1 = scmp.lt.s32.totalorder %s19_s13, %s19_s13 }
   0x6   :  { %p1594_p0 = scmp.ne.s32.totalorder %s19_s13, %s1593_s14  ;;  %p1599_p2 = scmp.lt.s32.totalorder %s1593_s14, %s1593_s14 }
   0x8   :  { %p1600_p3 = por %p1599_p2, %p1598_p1 }
   0xa   :  { %p1601_p4 = pnand %p1600_p3, %p1594_p0 }
   0xc   :  { %1604 = shalt.err (!%p1601_p4)
}
   0xd   :  { %s1674_s15 = smov 128   ;;  %s1675_s16 = smov 8  }
   0xe   :  { %24 = dma.hbm_to_vmem [thread:$0]  %s2265_s0, 1024, %s19_s13, [#allocation3], %s1674_s15, %s1674_s15, %s1675_s16  }
   0xf   :  { %s1676_s19 = smov [#allocation5]  }
  0x10   :  { %s30_s20 = sshll.u32 %s1676_s19, 4  ;;  %s31_s20 = int_to_ptr.vmem [resolvable:$true] %s30_s20 }
  0x11   :  { %s1613_s21 = scalar_lea.vmem %s31_s20, 7168  ;;  %p1618_p6 = scmp.lt.s32.totalorder %s31_s20, %s31_s20 }
  0x12   :  { %p1614_p5 = scmp.ne.s32.totalorder %s31_s20, %s1613_s21  ;;  %p1619_p7 = scmp.lt.s32.totalorder %s1613_s21, %s1613_s21 }
  0x14   :  { %p1620_p8 = por %p1619_p7, %p1618_p6 }
  0x16   :  { %p1621_p9 = pnand %p1620_p8, %p1614_p5 }
  0x18   :  { %1624 = shalt.err (!%p1621_p9)
}
  0x19   :  { %36 = dma.hbm_to_vmem [thread:$0]  %s2266_s1, 7168, %s31_s20, [#allocation6], %s1674_s15, %s1674_s15, %s1675_s16  }
  0x1a   :  { %1665 = dma.done.wait [#allocation3], 1024  }
  0x1b   :  { %1666 = vsyncadd [#allocation3], 4294966272 }
  0x1c   :  { %1667 = dma.done.wait [#allocation6], 7168  }
  0x1d   :  { %1668 = vsyncadd [#allocation6], 4294960128  ;;  %v50_v0 = vld [vmem:[#allocation5 + $0x38] sm:$0xff]  ;;  %v49_v4 = vld [vmem:[#allocation5 + $0x30] sm:$0xff]  ;;  %vm129_vm0 = vcmask 523264   ;;  %s1678_s0 = smov [#allocation8]  }
  0x1e   :  { %v59_v1 = vld [vmem:[#allocation5 + $0x78] sm:$0xff]  ;;  %v58_v5 = vld [vmem:[#allocation5 + $0x70] sm:$0xff]  ;;  %v48_v8 = vld [vmem:[#allocation5 + $0x28] sm:$0xff]  ;;  %s1257_s1 = sshll.u32 %s1678_s0, 4  ;;  %s2213_s1 = int_to_ptr.vmem [resolvable:$true] %s1257_s1 }
  0x1f   :  { %v1712_v2 = vld [vmem:[#allocation5 + $0x1b8] sm:$0xff]  ;;  %v112_v3 = vmul.f32 %v59_v1, %v50_v0  ;;  %v1714_v6 = vld [vmem:[#allocation5 + $0x1b0] sm:$0xff]  ;;  %v111_v7 = vmul.f32 %v58_v5, %v49_v4  ;;  %v57_v9 = vld [vmem:[#allocation5 + $0x68] sm:$0xff]  ;;  %s1625_s24 = scalar_lea.vmem %s2213_s1, 1024  ;;  %p1630_p11 = scmp.lt.s32.totalorder %s2213_s1, %s2213_s1 }
  0x20   :  { %2278 = vst [vmem:[#allocation14_spill] sm:$0xff] %v1712_v2  ;;  %2279 = vst [vmem:[#allocation15_spill] sm:$0xff] %v1714_v6  ;;  %v1716_v10 = vld [vmem:[#allocation5 + $0x1a8] sm:$0xff]  ;;  %v110_v12 = vmul.f32 %v57_v9, %v48_v8  ;;  %v47_v13 = vld [vmem:[#allocation5 + $0x20] sm:$0xff]  ;;  %p1626_p10 = scmp.ne.s32.totalorder %s2213_s1, %s1625_s24  ;;  %p1631_p12 = scmp.lt.s32.totalorder %s1625_s24, %s1625_s24 }
  0x21   :  { %v1719_v11 = vmul.f32 %v112_v3, %v1712_v2  ;;  %v56_v14 = vld [vmem:[#allocation5 + $0x60] sm:$0xff]  ;;  %v1724_v16 = vmul.f32 %v111_v7, %v1714_v6  ;;  %v46_v18 = vld [vmem:[#allocation5 + $0x18] sm:$0xff]  ;;  %v45_v24 = vld [vmem:[#allocation5 + $0x10] sm:$0xff]  ;;  %vm1029_vm7 = vcmp.gt.f32.partialorder %v1716_v10, 0.0 }
  0x22   :  { %v1721_v15 = vld [vmem:[#allocation5 + $0x1a0] sm:$0xff]  ;;  %v109_v17 = vmul.f32 %v56_v14, %v47_v13  ;;  %v55_v19 = vld [vmem:[#allocation5 + $0x58] sm:$0xff]  ;;  %v1732_v22 = vmul.f32 %v110_v12, %v1716_v10  ;;  %v54_v25 = vld [vmem:[#allocation5 + $0x50] sm:$0xff]  ;;  %p1632_p13 = por %p1631_p12, %p1630_p11 }
  0x23   :  { %2280 = vst [vmem:[#allocation16_spill] sm:$0xff] %v1721_v15  ;;  %v1726_v20 = vld [vmem:[#allocation5 + $0x198] sm:$0xff]  ;;  %v1729_v21 = vand.u32 4294901760, %v1719_v11  ;;  %v108_v23 = vmul.f32 %v55_v19, %v46_v18  ;;  %v1734_v26 = vld [vmem:[#allocation5 + $0x190] sm:$0xff]  ;;  %v1737_v27 = vand.u32 4294901760, %v1724_v16  ;;  %v107_v29 = vmul.f32 %v54_v25, %v45_v24  ;;  %v44_v30 = vld [vmem:[#allocation5 + $0x8] sm:$0xff] }
  0x24   :  { %v1740_v28 = vmul.f32 %v109_v17, %v1721_v15  ;;  %v53_v31 = vld [vmem:[#allocation5 + $0x48] sm:$0xff]  ;;  %v1746_v33 = vand.u32 4294901760, %v1732_v22  ;;  %v43_v37 = vld [vmem:[#allocation5] sm:$0xff]  ;;  %v123_v62 = vld [vmem:[#allocation2 + $0x10] sm:$0xff]  ;;  %vm1027_vm3 = vcmp.gt.f32.partialorder %v1726_v20, 0.0  ;;  %vm1026_vm6 = vcmp.gt.f32.partialorder %v1734_v26, 0.0  ;;  %p1633_p0 = pnand %p1632_p13, %p1626_p10 }
  0x25   :  { %v1742_v32 = vld [vmem:[#allocation5 + $0x188] sm:$0xff]  ;;  %1378 = vmatprep.subr.mxu0 %v1729_v21  ;;  %v1749_v34 = vmul.f32 %v108_v23, %v1726_v20  ;;  %v1753_v35 = vsub.f32 %v1719_v11, %v1729_v21  ;;  %v106_v36 = vmul.f32 %v53_v31, %v44_v30  ;;  %v52_v38 = vld [vmem:[#allocation5 + $0x40] sm:$0xff]  ;;  %v1762_v41 = vmul.f32 %v107_v29, %v1734_v26  ;;  %v124_v9 = vld [vmem:[#allocation2 + $0x18] sm:$0xff] }
  0x26   :  { %v1755_v39 = vld [vmem:[#allocation5 + $0x180] sm:$0xff]  ;;  %1379 = vmatpush3.msra.mxu0 %v1729_v21  ;;  %v1759_v40 = vand.u32 4294901760, %v1740_v28  ;;  %v1766_v42 = vsub.f32 %v1724_v16, %v1737_v27  ;;  %v105_v43 = vmul.f32 %v52_v38, %v43_v37  ;;  %v1780_v48 = vsub.f32 %v1732_v22, %v1746_v33  ;;  %v122_v53 = vld [vmem:[#allocation2 + $0x8] sm:$0xff]  ;;  %v63_v20 = vld [vmem:[#allocation5 + $0x90] sm:$0xff] }
  0x27   :  { %v121_v44 = vld [vmem:[#allocation2] sm:$0xff]  ;;  %1380 = vmatprep.subr.mxu0 %v1737_v27  ;;  %v1770_v45 = vand.u32 4294901760, %v1749_v34  ;;  %v1773_v46 = vand.u32 4294901760, %v1753_v35  ;;  %v1776_v47 = vmul.f32 %v106_v36, %v1742_v32  ;;  %v1784_v49 = vand.u32 4294901760, %v1762_v41  ;;  %v91_v10 = vld [vmem:[#allocation5 + $0x158] sm:$0xff] }
  0x28   :  { %1381 = vmatpush3.msra.mxu0 %v1737_v27  ;;  %v1787_v50 = vand.u32 4294901760, %v1766_v42  ;;  %v1790_v51 = vmul.f32 %v105_v43, %v1755_v39  ;;  %v1794_v52 = vsub.f32 %v1740_v28, %v1759_v40  ;;  %v1803_v56 = vand.u32 4294901760, %v1780_v48 }
  0x29   :  { %1382 = vmatprep.subr.mxu0 %v1746_v33  ;;  %v327_v54 = vsub.f32 %v1753_v35, %v1773_v46  ;;  %v1800_v55 = vand.u32 4294901760, %v1776_v47  ;;  %v131_v57 = vsel %vm129_vm0, %v121_v44, 0  ;;  %v134_v1 = vsel %vm129_vm0, %v122_v53, 0  ;;  %v125_v44 = vld [vmem:[#allocation2 + $0x20] sm:$0xff] }
  0x2a   :  { %1383 = vmatpush3.msra.mxu0 %v1746_v33  ;;  %v334_v58 = vsub.f32 %v1766_v42, %v1787_v50  ;;  %v1810_v59 = vand.u32 4294901760, %v1790_v51  ;;  %v1813_v60 = vand.u32 4294901760, %v1794_v52  ;;  %v1815_v61 = vand.u32 4294901760, %v131_v57 }
  0x2b   :  { %1384 = vmatprep.subr.mxu0 %v1759_v40  ;;  %v328_v63 = vand.u32 4294901760, %v327_v54  ;;  %v341_v0 = vsub.f32 %v1780_v48, %v1803_v56  ;;  %v1823_v3 = vsub.f32 %v1749_v34, %v1770_v45  ;;  %v1831_v8 = vand.u32 4294901760, %v134_v1 }
  0x2c   :  { %1385 = vmatpush3.msra.mxu0 %v1759_v40  ;;  %v335_v4 = vand.u32 4294901760, %v334_v58  ;;  %v348_v5 = vsub.f32 %v1794_v52, %v1813_v60  ;;  %v1829_v7 = vsub.f32 %v131_v57, %v1815_v61  ;;  %1422 = vmatprep.mubr.f32.mxu1 %v1815_v61  ;;  %v1840_v14 = vsub.f32 %v1762_v41, %v1784_v49 }
  0x2d   :  { %1386 = vmatprep.subr.mxu0 %v1770_v45  ;;  %1406 = vmatprep.subr.mxu1 %v328_v63  ;;  %v342_v12 = vand.u32 4294901760, %v341_v0  ;;  %v1836_v13 = vand.u32 4294901760, %v1823_v3  ;;  %v137_v17 = vsel %vm129_vm0, %v123_v62, 0  ;;  %v1846_v23 = vsub.f32 %v134_v1, %v1831_v8 }
  0x2e   :  { %1387 = vmatpush3.msra.mxu0 %v1770_v45  ;;  %1407 = vmatpush3.msra.mxu1 %v328_v63  ;;  %v349_v18 = vand.u32 4294901760, %v348_v5  ;;  %v2270_v19 = vand.u32 4294901760, %v1829_v7  ;;  %v1848_v24 = vand.u32 4294901760, %v137_v17  ;;  %v1854_v29 = vand.u32 4294901760, %v1840_v14  ;;  %v127_v5 = vld [vmem:[#allocation2 + $0x30] sm:$0xff] }
  0x2f   :  { %1388 = vmatprep.subr.mxu0 %v1784_v49  ;;  %1408 = vmatprep.subr.mxu1 %v335_v4  ;;  %v355_v25 = vsub.f32 %v1823_v3, %v1836_v13  ;;  %v140_v30 = vsel %vm129_vm0, %v124_v9, 0  ;;  %v1859_v31 = vsub.f32 %v1776_v47, %v1800_v55  ;;  %v2269_v37 = vand.u32 4294901760, %v1846_v23 }
  0x30   :  { %1389 = vmatpush3.msra.mxu0 %v1784_v49  ;;  %1409 = vmatpush3.msra.mxu1 %v335_v4  ;;  %v230_v36 = vsub.f32 %v1829_v7, %v2270_v19  ;;  %v1867_v38 = vsub.f32 %v137_v17, %v1848_v24  ;;  %v1869_v43 = vand.u32 4294901760, %v140_v30  ;;  %v362_v54 = vsub.f32 %v1840_v14, %v1854_v29  ;;  %v126_v4 = vld [vmem:[#allocation2 + $0x28] sm:$0xff] }
  0x31   :  { %1390 = vmatprep.subr.mxu0 %v1800_v55  ;;  %1410 = vmatprep.subr.mxu1 %v342_v12  ;;  %v356_v53 = vand.u32 4294901760, %v355_v25  ;;  %v1875_v57 = vand.u32 4294901760, %v1859_v31  ;;  %v1879_v58 = vsub.f32 %v1790_v51, %v1810_v59  ;;  %v240_v63 = vsub.f32 %v1846_v23, %v2269_v37 }
  0x32   :  { %1391 = vmatpush3.msra.mxu0 %v1800_v55  ;;  %1411 = vmatpush3.msra.mxu1 %v342_v12  ;;  %v231_v62 = vand.u32 4294901760, %v230_v36  ;;  %v2275_v0 = vand.u32 4294901760, %v1867_v38  ;;  %v1887_v1 = vsub.f32 %v140_v30, %v1869_v43  ;;  %v363_v9 = vand.u32 4294901760, %v362_v54  ;;  %v128_v54 = vld [vmem:[#allocation2 + $0x38] sm:$0xff] }
  0x33   :  { %1392 = vmatprep.subr.mxu0 %v1810_v59  ;;  %1412 = vmatprep.subr.mxu1 %v349_v18  ;;  %v369_v17 = vsub.f32 %v1859_v31, %v1875_v57  ;;  %v1893_v12 = vand.u32 4294901760, %v1879_v58  ;;  %v143_v25 = vsel %vm129_vm0, %v125_v44, 0  ;;  %v241_v36 = vand.u32 4294901760, %v240_v63 }
  0x34   :  { %1393 = vmatpush3.msra.mxu0 %v1810_v59  ;;  %1394 = vmatprep.mubr.f32.mxu0 %v231_v62  ;;  %v250_v30 = vsub.f32 %v1867_v38, %v2275_v0  ;;  %v259_v37 = vand.u32 4294901760, %v1887_v1  ;;  %v1901_v19 = vand.u32 4294901760, %v143_v25  ;;  %v146_v2 = vsel %vm129_vm0, %v126_v4, 0 }
  0x35   :  { %1413 = vmatpush3.msra.mxu1 %v349_v18  ;;  %1434 = vmatprep.subr.mxu0 %v1753_v35  ;;  %v370_v6 = vand.u32 4294901760, %v369_v17  ;;  %v376_v44 = vsub.f32 %v1879_v58, %v1893_v12  ;;  %v149_v62 = vsel %vm129_vm0, %v127_v5, 0  ;;  %v1914_v18 = vand.u32 4294901760, %v146_v2 }
  0x36   :  { %1395 = vmatmul.mubr.f32.vlgmr.msra.gmra.mxu0 %v241_v36  ;;  %1414 = vmatprep.subr.mxu1 %v356_v53  ;;  %v251_v63 = vand.u32 4294901760, %v250_v30  ;;  %v260_v0 = vsub.f32 %v1887_v1, %v259_v37  ;;  %v1912_v15 = vsub.f32 %v143_v25, %v1901_v19  ;;  %v1917_v17 = vand.u32 4294901760, %v149_v62 }
  0x37   :  { %1415 = vmatpush3.msra.mxu1 %v356_v53  ;;  %1435 = vmatpush3.msra.mxu0 %v1753_v35  ;;  %v152_v4 = vsel %vm129_vm0, %v128_v54, 0  ;;  %v1923_v30 = vsub.f32 %v146_v2, %v1914_v18  ;;  %v377_v53 = vand.u32 4294901760, %v376_v44  ;;  %vm1025_vm1 = vcmp.gt.f32.partialorder %v1742_v32, 0.0  ;;  %v2286_v32 = vld [vmem:[#allocation16_spill] sm:$0xff] }
  0x38   :  { %1416 = vmatprep.subr.mxu1 %v363_v9  ;;  %1436 = vmatprep.subr.mxu0 %v1766_v42  ;;  %v261_v5 = vand.u32 4294901760, %v260_v0  ;;  %v269_v36 = vand.u32 4294901760, %v1912_v15  ;;  %v1925_v25 = vand.u32 4294901760, %v152_v4  ;;  %v1928_v35 = vsub.f32 %v149_v62, %v1917_v17 }
  0x39   :  { %1397 = vmatprep.mubr.f32.mxu0 %v251_v63  ;;  %1417 = vmatpush3.msra.mxu1 %v363_v9  ;;  %v279_v54 = vand.u32 4294901760, %v1923_v30  ;;  %vm1024_vm2 = vcmp.gt.f32.partialorder %v1755_v39, 0.0  ;;  %vm1028_vm9 = vcmp.gt.f32.partialorder %v2286_v32, 0.0 }
  0x3a   :  { %1437 = vmatpush3.msra.mxu0 %v1766_v42  ;;  %1418 = vmatprep.subr.mxu1 %v370_v6  ;;  %v270_v0 = vsub.f32 %v1912_v15, %v269_v36  ;;  %v1936_v2 = vsub.f32 %v152_v4, %v1925_v25  ;;  %v289_v9 = vand.u32 4294901760, %v1928_v35 }
  0x3b   :  { %1398 = vmatmul.mubr.f32.gmra.mxu0 %v261_v5  ;;  %1438 = vmatprep.subr.mxu0 %v1780_v48  ;;  %v280_v42 = vsub.f32 %v1923_v30, %v279_v54 }
  0x3c   :  { %1419 = vmatpush3.msra.mxu1 %v370_v6  ;;  %1439 = vmatpush3.msra.mxu0 %v1780_v48  ;;  %v271_v44 = vand.u32 4294901760, %v270_v0  ;;  %v299_v62 = vand.u32 4294901760, %v1936_v2  ;;  %v290_v63 = vsub.f32 %v1928_v35, %v289_v9 }
  0x3d   :  { %1420 = vmatprep.subr.mxu1 %v377_v53  ;;  %1440 = vmatprep.subr.mxu0 %v1794_v52  ;;  %v281_v4 = vand.u32 4294901760, %v280_v42 }
  0x3e   :  { %1400 = vmatprep.mubr.f32.mxu0 %v271_v44  ;;  %1421 = vmatpush3.msra.mxu1 %v377_v53  ;;  %v300_v6 = vsub.f32 %v1936_v2, %v299_v62  ;;  %v291_v48 = vand.u32 4294901760, %v290_v63 }
  0x3f   :  { %1441 = vmatpush3.msra.mxu0 %v1794_v52  ;;  %1423 = vmatmul.mubr.f32.vlgmr.msra.gmra.mxu1 %v1831_v8  ;;  %v2283_v52 = vand.u32 4294901760, %v1867_v38 }
  0x40   :  { %1401 = vmatmul.mubr.f32.gmra.mxu0 %v281_v4  ;;  %1442 = vmatprep.subr.mxu0 %v1823_v3  ;;  %v301_v5 = vand.u32 4294901760, %v300_v6 }
  0x41   :  { %1462 = vmatprep.subr.mxu1 %v1729_v21  ;;  %1443 = vmatpush3.msra.mxu0 %v1823_v3 }
  0x42   :  { %1463 = vmatpush3.msra.mxu1 %v1729_v21  ;;  %1444 = vmatprep.subr.mxu0 %v1840_v14 }
  0x43   :  { %1464 = vmatprep.subr.mxu1 %v1737_v27  ;;  %1403 = vmatprep.mubr.f32.mxu0 %v291_v48 }
  0x44   :  { %1425 = vmatprep.mubr.f32.mxu1 %v1848_v24  ;;  %1445 = vmatpush3.msra.mxu0 %v1840_v14 }
  0x45   :  { %1465 = vmatpush3.msra.mxu1 %v1737_v27  ;;  %1404 = vmatmul.mubr.f32.gmra.mxu0 %v301_v5 }
  0x46   :  { %1426 = vmatmul.mubr.f32.gmra.mxu1 %v1869_v43  ;;  %1446 = vmatprep.subr.mxu0 %v1859_v31 }
  0x47   :  { %1466 = vmatprep.subr.mxu1 %v1746_v33  ;;  %1447 = vmatpush3.msra.mxu0 %v1859_v31 }
  0x48   :  { %1467 = vmatpush3.msra.mxu1 %v1746_v33  ;;  %1448 = vmatprep.subr.mxu0 %v1879_v58 }
  0x49   :  { %1468 = vmatprep.subr.mxu1 %v1759_v40  ;;  %1428 = vmatprep.mubr.f32.mxu1 %v1901_v19 }
  0x4a   :  { %1449 = vmatpush3.msra.mxu0 %v1879_v58  ;;  %1450 = vmatprep.mubr.f32.mxu0 %v1829_v7  ;;  %v1041_v58 = vsub.f32 0.0, %v1776_v47 }
  0x4b   :  { %1469 = vmatpush3.msra.mxu1 %v1759_v40  ;;  %1451 = vmatmul.mubr.f32.vlgmr.msra.gmra.mxu0 %v1846_v23 }
  0x4c   :  { %1429 = vmatmul.mubr.f32.gmra.mxu1 %v1914_v18  ;;  %1470 = vmatprep.subr.mxu1 %v1770_v45 }
  0x4d   :  { %1490 = vmatprep.subr.mxu0 %v1773_v46  ;;  %1471 = vmatpush3.msra.mxu1 %v1770_v45 }
  0x4e   :  { %1491 = vmatpush3.msra.mxu0 %v1773_v46  ;;  %1472 = vmatprep.subr.mxu1 %v1784_v49  ;;  %v2281_v46 = vand.u32 4294901760, %v1829_v7 }
  0x4f   :  { %1492 = vmatprep.subr.mxu0 %v1787_v50  ;;  %1431 = vmatprep.mubr.f32.mxu1 %v1917_v17 }
  0x50   :  { %1453 = vmatprep.mubr.f32.mxu0 %v1867_v38  ;;  %1473 = vmatpush3.msra.mxu1 %v1784_v49 }
  0x51   :  { %1493 = vmatpush3.msra.mxu0 %v1787_v50  ;;  %1432 = vmatmul.mubr.f32.gmra.mxu1 %v1925_v25  ;;  %v2282_v50 = vand.u32 4294901760, %v1846_v23 }
  0x52   :  { %1454 = vmatmul.mubr.f32.gmra.mxu0 %v1887_v1  ;;  %1474 = vmatprep.subr.mxu1 %v1800_v55 }
  0x53   :  { %1494 = vmatprep.subr.mxu0 %v1803_v56  ;;  %1475 = vmatpush3.msra.mxu1 %v1800_v55 }
  0x54   :  { %1495 = vmatpush3.msra.mxu0 %v1803_v56  ;;  %1476 = vmatprep.subr.mxu1 %v1810_v59 }
  0x55   :  { %1496 = vmatprep.subr.mxu0 %v1813_v60  ;;  %1456 = vmatprep.mubr.f32.mxu0 %v1912_v15 }
  0x56   :  { %1477 = vmatpush3.msra.mxu1 %v1810_v59  ;;  %1478 = vmatprep.mubr.f32.mxu1 %v2281_v46 }
  0x57   :  { %1497 = vmatpush3.msra.mxu0 %v1813_v60  ;;  %1479 = vmatmul.mubr.f32.vlgmr.msra.gmra.mxu1 %v2282_v50 }
  0x58   :  { %1457 = vmatmul.mubr.f32.gmra.mxu0 %v1923_v30  ;;  %1498 = vmatprep.subr.mxu0 %v1836_v13  ;;  %v1050_v30 = vmul.f32 1.442695, %v1041_v58 }
  0x59   :  { %1518 = vmatprep.subr.mxu1 %v1729_v21  ;;  %1499 = vmatpush3.msra.mxu0 %v1836_v13 }
  0x5a   :  { %1519 = vmatpush3.msra.mxu1 %v1729_v21  ;;  %1500 = vmatprep.subr.mxu0 %v1854_v29  ;;  %1553 = vpow2.f32 %v1050_v30 }
  0x5b   :  { %1520 = vmatprep.subr.mxu1 %v1737_v27  ;;  %1459 = vmatprep.mubr.f32.mxu0 %v1928_v35 }
  0x5c   :  { %1481 = vmatprep.mubr.f32.mxu1 %v2283_v52  ;;  %1501 = vmatpush3.msra.mxu0 %v1854_v29 }
  0x5d   :  { %1521 = vmatpush3.msra.mxu1 %v1737_v27  ;;  %1460 = vmatmul.mubr.f32.gmra.mxu0 %v1936_v2  ;;  %v1044_v2 = vsub.f32 0.0, %v1740_v28 }
  0x5e   :  { %1482 = vmatmul.mubr.f32.gmra.mxu1 %v259_v37  ;;  %1502 = vmatprep.subr.mxu0 %v1875_v57 }
  0x5f   :  { %1522 = vmatprep.subr.mxu1 %v1746_v33  ;;  %1503 = vmatpush3.msra.mxu0 %v1875_v57 }
  0x60   :  { %1523 = vmatpush3.msra.mxu1 %v1746_v33  ;;  %1504 = vmatprep.subr.mxu0 %v1893_v12 }
  0x61   :  { %1524 = vmatprep.subr.mxu1 %v1759_v40  ;;  %1484 = vmatprep.mubr.f32.mxu1 %v269_v36  ;;  %v1042_v36 = vsub.f32 0.0, %v1762_v41 }
  0x62   :  { %1505 = vmatpush3.msra.mxu0 %v1893_v12  ;;  %1506 = vmatprep.mubr.f32.mxu0 %v1815_v61  ;;  %v1040_v12 = vsub.f32 0.0, %v1790_v51 }
  0x63   :  { %1525 = vmatpush3.msra.mxu1 %v1759_v40  ;;  %1507 = vmatmul.mubr.f32.vlgmr.msra.gmra.mxu0 %v1831_v8  ;;  %v1052_v44 = vmul.f32 1.442695, %v1042_v36 }
  0x64   :  { %1485 = vmatmul.mubr.f32.gmra.mxu1 %v279_v54  ;;  %1526 = vmatprep.subr.mxu1 %v1770_v45  ;;  %v1048_v35 = vmul.f32 1.442695, %v1040_v12 }
  0x65   :  { %1527 = vmatpush3.msra.mxu1 %v1770_v45  ;;  %1487 = vmatprep.mubr.f32.mxu1 %v289_v9 }
  0x66   :  { %1528 = vmatprep.subr.mxu1 %v1784_v49  ;;  %1509 = vmatprep.mubr.f32.mxu0 %v1848_v24  ;;  %1555 = vpow2.f32 %v1048_v35 }
  0x67   :  { %1529 = vmatpush3.msra.mxu1 %v1784_v49  ;;  %1510 = vmatmul.mubr.f32.gmra.mxu0 %v1869_v43 }
  0x68   :  { %1488 = vmatmul.mubr.f32.gmra.mxu1 %v299_v62  ;;  %1530 = vmatprep.subr.mxu1 %v1800_v55  ;;  %v1047_v62 = vsub.f32 0.0, %v1719_v11 }
  0x69   :  { %1531 = vmatpush3.msra.mxu1 %v1800_v55  ;;  %1512 = vmatprep.mubr.f32.mxu0 %v1901_v19 }
  0x6a   :  { %1532 = vmatprep.subr.mxu1 %v1810_v59  ;;  %1534 = vmatprep.mubr.f32.mxu1 %v1815_v61  ;;  %v1062_v50 = vmul.f32 1.442695, %v1047_v62 }
  0x6b   :  { %1533 = vmatpush3.msra.mxu1 %v1810_v59  ;;  %1513 = vmatmul.mubr.f32.gmra.mxu0 %v1914_v18 }
  0x6c   :  { %1535 = vmatmul.mubr.f32.vlgmr.msra.gmra.mxu1 %v1831_v8  ;;  %1515 = vmatprep.mubr.f32.mxu0 %v1917_v17 }
  0x6d   :  { %1537 = vmatprep.mubr.f32.mxu1 %v1848_v24 }
  0x6f   :  { %1516 = vmatmul.mubr.f32.gmra.mxu0 %v1925_v25 }
  0x70   :  { %1538 = vmatmul.mubr.f32.gmra.mxu1 %v1869_v43 }
  0x71   :  { %1540 = vmatprep.mubr.f32.mxu1 %v1901_v19 }
  0x74   :  { %1541 = vmatmul.mubr.f32.gmra.mxu1 %v1914_v18 }
  0x75   :  { %1543 = vmatprep.mubr.f32.mxu1 %v1917_v17  ;;  %v1043_v17 = vsub.f32 0.0, %v1749_v34 }
  0x77   :  { %v1054_v54 = vmul.f32 1.442695, %v1043_v17 }
  0x78   :  { %1544 = vmatmul.mubr.f32.gmra.mxu1 %v1925_v25  ;;  %v1045_v25 = vsub.f32 0.0, %v1732_v22  ;;  %v1056_v22 = vmul.f32 1.442695, %v1044_v2 }
  0x79   :  { %1557 = vpow2.f32 %v1054_v54 }
  0x7a   :  { %v1058_v51 = vmul.f32 1.442695, %v1045_v25  ;;  %1559 = vpow2.f32 %v1052_v44 }
  0x7c   :  { %1561 = vpow2.f32 %v1058_v51 }
  0x7d   :  { %1563 = vpow2.f32 %v1056_v22 }
  0x7e   :  { %1565 = vpow2.f32 %v1062_v50 }
  0xf6   :  { %v1396_v15 = vpop.f32.mrf.mxu0 }
  0xf8   :  { %v233_v21 = vpop.f32.mrf.mxu0 }
  0xfb   :  { %v1399_v27 = vpop.f32.mrf.mxu0 }
  0xfd   :  { %v253_v33 = vpop.f32.mrf.mxu0 }
  0xff   :  { %v1424_v40 = vpop.f32.mrf.mxu1 }
 0x100   :  { %v1402_v45 = vpop.f32.mrf.mxu0  ;;  %v421_v9 = vadd.f32 %v1424_v40, %v1396_v15 }
 0x101   :  { %v414_v55 = vpop.f32.mrf.mxu1 }
 0x102   :  { %v2056_v49 = vpop.f32.mrf.mxu0  ;;  %v415_v34 = vadd.f32 %v414_v55, %v233_v21 }
 0x105   :  { %v2058_v56 = vpop.f32.mrf.mxu0 }
 0x106   :  { %v1427_v59 = vpop.f32.mrf.mxu1 }
 0x107   :  { %v2060_v60 = vpop.f32.mrf.mxu0  ;;  %v433_v6 = vadd.f32 %v1427_v59, %v1399_v27 }
 0x108   :  { %v426_v61 = vpop.f32.mrf.mxu1 }
 0x109   :  { %v427_v52 = vadd.f32 %v426_v61, %v253_v33 }
 0x10b   :  { %v1452_v3 = vpop.f32.mrf.mxu0 }
 0x10c   :  { %v1430_v7 = vpop.f32.mrf.mxu1  ;;  %v552_v63 = vadd.f32 %v1452_v3, %v421_v9  ;;  %v1046_v3 = vsub.f32 0.0, %v1724_v16 }
 0x10d   :  { %v544_v13 = vpop.f32.mrf.mxu0  ;;  %v445_v21 = vadd.f32 %v1430_v7, %v1402_v45 }
 0x10e   :  { %v438_v8 = vpop.f32.mrf.mxu1  ;;  %v545_v48 = vadd.f32 %v544_v13, %v415_v34 }
 0x111   :  { %v2062_v14 = vpop.f32.mrf.mxu1 }
 0x112   :  { %v1455_v19 = vpop.f32.mrf.mxu0  ;;  %v457_v45 = vadd.f32 %v2062_v14, %v2058_v56 }
 0x113   :  { %v2064_v23 = vpop.f32.mrf.mxu1  ;;  %v566_v15 = vadd.f32 %v1455_v19, %v433_v6 }
 0x114   :  { %v558_v24 = vpop.f32.mrf.mxu0 }
 0x115   :  { %v559_v12 = vadd.f32 %v558_v24, %v427_v52  ;;  %v1060_v24 = vmul.f32 1.442695, %v1046_v3 }
 0x117   :  { %v1480_v29 = vpop.f32.mrf.mxu1 }
 0x118   :  { %v1458_v31 = vpop.f32.mrf.mxu0  ;;  %v683_v5 = vadd.f32 %v1480_v29, %v552_v63  ;;  %v439_v29 = vadd.f32 %v438_v8, %v2056_v49  ;;  %v451_v49 = vadd.f32 %v2064_v23, %v2060_v60 }
 0x119   :  { %v674_v38 = vpop.f32.mrf.mxu1  ;;  %v580_v36 = vadd.f32 %v1458_v31, %v445_v21 }
 0x11a   :  { %v572_v37 = vpop.f32.mrf.mxu0  ;;  %v675_v40 = vadd.f32 %v674_v38, %v545_v48 }
 0x11b   :  { %v573_v7 = vadd.f32 %v572_v37, %v439_v29 }
 0x11d   :  { %v2066_v43 = vpop.f32.mrf.mxu0 }
 0x11e   :  { %v1483_v57 = vpop.f32.mrf.mxu1  ;;  %v594_v8 = vadd.f32 %v2066_v43, %v457_v45  ;;  %v62_v45 = vld [vmem:[#allocation5 + $0x88] sm:$0xff] }
 0x11f   :  { %v2069_v1 = vpop.f32.mrf.mxu0  ;;  %v699_v17 = vadd.f32 %v1483_v57, %v566_v15 }
 0x120   :  { %v690_v18 = vpop.f32.mrf.mxu1  ;;  %v587_v44 = vadd.f32 %v2069_v1, %v451_v49  ;;  %v80_v49 = vld [vmem:[#allocation5 + $0x108] sm:$0xff] }
 0x121   :  { %v691_v33 = vadd.f32 %v690_v18, %v559_v12 }
 0x123   :  { %v1508_v53 = vpop.f32.mrf.mxu0 }
 0x124   :  { %v1486_v0 = vpop.f32.mrf.mxu1  ;;  %v832_v58 = vadd.f32 %v1508_v53, %v683_v5 }
 0x125   :  { %v825_v47 = vpop.f32.mrf.mxu0  ;;  %v715_v25 = vadd.f32 %v1486_v0, %v580_v36 }
 0x126   :  { %v706_v42 = vpop.f32.mrf.mxu1  ;;  %v826_v27 = vadd.f32 %v825_v47, %v675_v40  ;;  %v1554_v47 = vpop.eup %1553 }
 0x127   :  { %v1511_v41 = vpop.f32.mrf.mxu0  ;;  %v707_v31 = vadd.f32 %v706_v42, %v573_v7  ;;  %v2084_v0 = vpop.eup %1555  ;;  %v71_v7 = vld [vmem:[#allocation5 + $0xc8] sm:$0xff] }
 0x128   :  { %v1489_v4 = vpop.f32.mrf.mxu1  ;;  %v844_v61 = vadd.f32 %v1511_v41, %v699_v17  ;;  %v2087_v63 = vpop.eup %1557  ;;  %v1065_v17 = vsub.f32 1.0, %v1554_v47  ;;  %v1222_v47 = vlaneseq }
 0x129   :  { %v837_v46 = vpop.f32.mrf.mxu0  ;;  %v731_v51 = vadd.f32 %v1489_v4, %v594_v8  ;;  %v2089_v41 = vpop.eup %1559  ;;  %v89_v8 = vld [vmem:[#allocation5 + $0x148] sm:$0xff] }
 0x12a   :  { %v722_v28 = vpop.f32.mrf.mxu1  ;;  %v838_v57 = vadd.f32 %v837_v46, %v691_v33  ;;  %v2091_v5 = vpop.eup %1561 }
 0x12b   :  { %v1514_v11 = vpop.f32.mrf.mxu0  ;;  %v723_v22 = vadd.f32 %v722_v28, %v587_v44  ;;  %v2093_v15 = vpop.eup %1563 }
 0x12c   :  { %v1536_v55 = vpop.f32.mrf.mxu1  ;;  %v856_v18 = vadd.f32 %v1514_v11, %v715_v25  ;;  %v81_v25 = vld [vmem:[#allocation5 + $0x110] sm:$0xff] }
 0x12d   :  { %v953_v59 = vadd.f32 %v1536_v55, %v832_v58  ;;  %v849_v13 = vpop.f32.mrf.mxu0  ;;  %v2095_v55 = vpop.eup %1565 }
 0x12e   :  { %v946_v30 = vpop.f32.mrf.mxu1  ;;  %v850_v62 = vadd.f32 %v849_v13, %v707_v31  ;;  %v1064_v13 = vsub.f32 1.0, %v2084_v0  ;;  %v1071_v31 = vsub.f32 1.0, %v2095_v55  ;;  %v1677_v0 = vmov 0.0  }
 0x12f   :  { %v993_v19 = vsub.f32 0.0, %v953_v59  ;;  %v947_v38 = vadd.f32 %v946_v30, %v826_v27  ;;  %v1517_v54 = vpop.f32.mrf.mxu0  ;;  %v1067_v30 = vsub.f32 1.0, %v2087_v63 }
 0x130   :  { %v1539_v16 = vpop.f32.mrf.mxu1  ;;  %v868_v6 = vadd.f32 %v1517_v54, %v731_v51 }
 0x131   :  { %v1002_v53 = vmul.f32 1.442695, %v993_v19  ;;  %v992_v35 = vsub.f32 0.0, %v947_v38  ;;  %v965_v2 = vadd.f32 %v1539_v16, %v844_v61  ;;  %v861_v23 = vpop.f32.mrf.mxu0  ;;  %v1066_v19 = vsub.f32 1.0, %v2089_v41 }
 0x132   :  { %v958_v9 = vpop.f32.mrf.mxu1  ;;  %v862_v50 = vadd.f32 %v861_v23, %v723_v22  ;;  %v1069_v16 = vsub.f32 1.0, %v2091_v5 }
 0x133   :  { %1567 = vpow2.f32 %v1002_v53  ;;  %v1000_v56 = vmul.f32 1.442695, %v992_v35  ;;  %v995_v14 = vsub.f32 0.0, %v965_v2  ;;  %v959_v37 = vadd.f32 %v958_v9, %v838_v57  ;;  %v61_v53 = vld [vmem:[#allocation5 + $0x80] sm:$0xff]  ;;  %v2287_v9 = vld [vmem:[#allocation14_spill] sm:$0xff] }
 0x134   :  { %v1542_v34 = vpop.f32.mrf.mxu1  ;;  %1569 = vpow2.f32 %v1060_v24  ;;  %v1068_v24 = vsub.f32 1.0, %v2093_v15  ;;  %v70_v35 = vld [vmem:[#allocation5 + $0xc0] sm:$0xff]  ;;  %vm1031_vm11 = vcmp.gt.f32.partialorder %v2287_v9, 0.0 }
 0x135   :  { %1571 = vpow2.f32 %v1000_v56  ;;  %v1006_v60 = vmul.f32 1.442695, %v995_v14  ;;  %v994_v43 = vsub.f32 0.0, %v959_v37  ;;  %v977_v42 = vadd.f32 %v1542_v34, %v856_v18  ;;  %v79_v56 = vld [vmem:[#allocation5 + $0x100] sm:$0xff] }
 0x136   :  { %v970_v48 = vpop.f32.mrf.mxu1  ;;  %v88_v14 = vld [vmem:[#allocation5 + $0x140] sm:$0xff] }
 0x137   :  { %1573 = vpow2.f32 %v1006_v60  ;;  %v1004_v1 = vmul.f32 1.442695, %v994_v43  ;;  %v997_v4 = vsub.f32 0.0, %v977_v42  ;;  %v971_v46 = vadd.f32 %v970_v48, %v850_v62  ;;  %v2288_v62 = vld [vmem:[#allocation15_spill] sm:$0xff] }
 0x138   :  { %v1545_v52 = vpop.f32.mrf.mxu1  ;;  %vm1030_vm13 = vcmp.gt.f32.partialorder %v2288_v62, 0.0 }
 0x139   :  { %1575 = vpow2.f32 %v1004_v1  ;;  %v1010_v40 = vmul.f32 1.442695, %v997_v4  ;;  %v996_v58 = vsub.f32 0.0, %v971_v46  ;;  %v989_v11 = vadd.f32 %v1545_v52, %v868_v6  ;;  %v64_v6 = vld [vmem:[#allocation5 + $0x98] sm:$0xff] }
 0x13a   :  { %v982_v21 = vpop.f32.mrf.mxu1  ;;  %v73_v52 = vld [vmem:[#allocation5 + $0xd8] sm:$0xff] }
 0x13b   :  { %1577 = vpow2.f32 %v1010_v40  ;;  %v1008_v28 = vmul.f32 1.442695, %v996_v58  ;;  %v999_v3 = vsub.f32 0.0, %v989_v11  ;;  %v983_v12 = vadd.f32 %v982_v21, %v862_v50  ;;  %v82_v58 = vld [vmem:[#allocation5 + $0x118] sm:$0xff] }
 0x13d   :  { %1579 = vpow2.f32 %v1008_v28  ;;  %v1014_v27 = vmul.f32 1.442695, %v999_v3  ;;  %v998_v59 = vsub.f32 0.0, %v983_v12 }
 0x13f   :  { %1581 = vpow2.f32 %v1014_v27  ;;  %v1012_v29 = vmul.f32 1.442695, %v998_v59 }
 0x140   :  { %v1568_v36 = vpop.eup %1567 }
 0x141   :  { %v2102_v33 = vpop.eup %1569  ;;  %vm1017_vm4 = vcmp.gt.f32.partialorder %v1568_v36, 0.01  ;;  %v1073_v61 = vmul.f32 %v1568_v36, %v1065_v17  ;;  %1583 = vpow2.f32 %v1012_v29  ;;  %v72_v17 = vld [vmem:[#allocation5 + $0xd0] sm:$0xff]  ;;  %v65_v36 = vld [vmem:[#allocation5 + $0xa0] sm:$0xff] }
 0x142   :  { %v1572_v38 = vpop.eup %1571  ;;  %vm2107_vm5 = vmand %vm1017_vm4, %vm1025_vm1  ;;  %v1070_v18 = vsub.f32 1.0, %v2102_v33 }
 0x143   :  { %v1081_v57 = vsel %vm2107_vm5, %v1073_v61, 0.0  ;;  %vm1016_vm8 = vcmp.gt.f32.partialorder %v1572_v38, 0.01  ;;  %v1072_v54 = vmul.f32 %v1572_v38, %v1064_v13  ;;  %v1275_v63 = vsel %vm2107_vm5, 1.0, %v1677_v0 }
 0x144   :  { %v1574_v2 = vpop.eup %1573  ;;  %1089 = vst [vmem:[#allocation8 + $0x8] sm:$0xff] %v1081_v57  ;;  %vm1032_vm10 = vmand %vm1016_vm8, %vm1024_vm2  ;;  %v1110_v39 = vmul.f32 %v1081_v57, %v62_v45  ;;  %v1131_v42 = vmul.f32 %v1081_v57, %v71_v7  ;;  %v1152_v41 = vmul.f32 %v1081_v57, %v80_v49  ;;  %v2134_v22 = vmul.f32 %v1081_v57, %v89_v8  ;;  %v66_v49 = vld [vmem:[#allocation5 + $0xa8] sm:$0xff] }
 0x145   :  { %v1080_v37 = vsel %vm1032_vm10, %v1072_v54, 0.0  ;;  %v1274_v44 = vsel %vm1032_vm10, 1.0, %v1677_v0  ;;  %vm1019_vm12 = vcmp.gt.f32.partialorder %v1574_v2, 0.01  ;;  %v1075_v51 = vmul.f32 %v1574_v2, %v1067_v30 }
 0x146   :  { %v1576_v34 = vpop.eup %1575  ;;  %v1109_v60 = vmul.f32 %v1080_v37, %v61_v53  ;;  %v1130_v23 = vmul.f32 %v1080_v37, %v70_v35  ;;  %1088 = vst [vmem:[#allocation8] sm:$0xff] %v1080_v37  ;;  %vm2130_vm14 = vmand %vm1019_vm12, %vm1027_vm3  ;;  %v1096_v1 = vadd.f32 %v1081_v57, %v1080_v37  ;;  %v1151_v4 = vmul.f32 %v1080_v37, %v79_v56  ;;  %v67_v56 = vld [vmem:[#allocation5 + $0xb0] sm:$0xff] }
 0x147   :  { %v1083_v48 = vsel %vm2130_vm14, %v1075_v51, 0.0  ;;  %v1172_v46 = vmul.f32 %v1080_v37, %v88_v14  ;;  %v1209_v50 = vadd.f32 %v1275_v63, %v1274_v44  ;;  %vm1018_vm15 = vcmp.gt.f32.partialorder %v1576_v34, 0.01  ;;  %v74_v14 = vld [vmem:[#allocation5 + $0xe0] sm:$0xff] }
 0x148   :  { %v1578_v5 = vpop.eup %1577  ;;  %1091 = vst [vmem:[#allocation8 + $0x18] sm:$0xff] %v1083_v48  ;;  %v1074_v15 = vmul.f32 %v1576_v34, %v1066_v19  ;;  %v1117_v21 = vadd.f32 %v1110_v39, %v1109_v60  ;;  %v1138_v28 = vadd.f32 %v1131_v42, %v1130_v23  ;;  %v1112_v3 = vmul.f32 %v1083_v48, %v64_v6  ;;  %vm2145_vm1 = vmand %vm1018_vm15, %vm1026_vm6  ;;  %v75_v34 = vld [vmem:[#allocation5 + $0xe8] sm:$0xff]  ;;  %v83_v60 = vld [vmem:[#allocation5 + $0x120] sm:$0xff] }
 0x149   :  { %vm1021_vm0 = vcmp.gt.f32.partialorder %v1578_v5, 0.01  ;;  %v1077_v40 = vmul.f32 %v1578_v5, %v1069_v16  ;;  %v2141_v12 = vsel %vm2130_vm14, 1.0, %v1677_v0  ;;  %v2149_v59 = vmul.f32 %v1083_v48, %v73_v52  ;;  %v76_v42 = vld [vmem:[#allocation5 + $0xf0] sm:$0xff] }
 0x14a   :  { %v1580_v11 = vpop.eup %1579  ;;  %v2153_v13 = vsel %vm2145_vm1, %v1074_v15, 0.0  ;;  %vm2157_vm2 = vmand %vm1021_vm0, %vm1029_vm7  ;;  %v2170_v45 = vmul.f32 %v1083_v48, %v82_v58  ;;  %v2172_v7 = vadd.f32 %v1152_v41, %v1151_v4  ;;  %v2199_v51 = vmul.f32 %v1083_v48, %v91_v10  ;;  %v77_v41 = vld [vmem:[#allocation5 + $0xf8] sm:$0xff]  ;;  %v90_v6 = vld [vmem:[#allocation5 + $0x150] sm:$0xff] }
 0x14b   :  { %vm1020_vm3 = vcmp.gt.f32.partialorder %v1580_v11, 0.01  ;;  %v1076_v30 = vmul.f32 %v1580_v11, %v1068_v24  ;;  %v1097_v61 = vadd.f32 %v1096_v1, %v2153_v13  ;;  %v1111_v19 = vmul.f32 %v2153_v13, %v63_v20  ;;  %1090 = vst [vmem:[#allocation8 + $0x10] sm:$0xff] %v2153_v13 }
 0x14c   :  { %v1582_v26 = vpop.eup %1581  ;;  %vm2166_vm4 = vmand %vm1020_vm3, %vm1028_vm9  ;;  %v1132_v16 = vmul.f32 %v2153_v13, %v72_v17  ;;  %v1276_v24 = vsel %vm2145_vm1, 1.0, %v1677_v0  ;;  %v2180_v57 = vsel %vm2157_vm2, %v1077_v40, 0.0  ;;  %v1153_v55 = vmul.f32 %v2153_v13, %v81_v25 }
 0x14d   :  { %v2184_v53 = vsel %vm2166_vm4, %v1076_v30, 0.0  ;;  %v1118_v54 = vadd.f32 %v1117_v21, %v1111_v19  ;;  %1093 = vst [vmem:[#allocation8 + $0x28] sm:$0xff] %v2180_v57  ;;  %v1079_v2 = vmul.f32 %v1582_v26, %v1071_v31  ;;  %vm1023_vm5 = vcmp.gt.f32.partialorder %v1582_v26, 0.01  ;;  %v68_v31 = vld [vmem:[#allocation5 + $0xb8] sm:$0xff] }
 0x14e   :  { %v1584_v35 = vpop.eup %1583  ;;  %v1113_v32 = vmul.f32 %v2184_v53, %v65_v36  ;;  %1092 = vst [vmem:[#allocation8 + $0x20] sm:$0xff] %v2184_v53  ;;  %vm2195_vm7 = vmand %vm1023_vm5, %vm1031_vm11  ;;  %v1098_v44 = vadd.f32 %v1097_v61, %v1083_v48  ;;  %v1180_v39 = vadd.f32 %v2134_v22, %v1172_v46  ;;  %v1210_v63 = vadd.f32 %v1276_v24, %v1209_v50  ;;  %v84_v46 = vld [vmem:[#allocation5 + $0x128] sm:$0xff] }
 0x14f   :  { %vm1022_vm6 = vcmp.gt.f32.partialorder %v1584_v35, 0.01  ;;  %v1078_v8 = vmul.f32 %v1584_v35, %v1070_v18  ;;  %v2210_v18 = vsel %vm2195_vm7, %v1079_v2, 0.0  ;;  %v1119_v9 = vadd.f32 %v1118_v54, %v1112_v3 }
 0x150   :  { %vm2204_vm8 = vmand %vm1022_vm6, %vm1030_vm13  ;;  %v1099_v62 = vadd.f32 %v1098_v44, %v2184_v53  ;;  %v1114_v43 = vmul.f32 %v2180_v57, %v66_v49  ;;  %1095 = vst [vmem:[#allocation8 + $0x38] sm:$0xff] %v2210_v18  ;;  %v1134_v5 = vmul.f32 %v2184_v53, %v74_v14  ;;  %v1139_v1 = vadd.f32 %v1138_v28, %v1132_v16 }
 0x151   :  { %v1086_v23 = vsel %vm2204_vm8, %v1078_v8, 0.0  ;;  %v1120_v48 = vadd.f32 %v1119_v9, %v1113_v32  ;;  %v1278_v4 = vsel %vm2166_vm4, 1.0, %v1677_v0  ;;  %v1116_v52 = vmul.f32 %v2210_v18, %v68_v31 }
 0x152   :  { %v1115_v22 = vmul.f32 %v1086_v23, %v67_v56  ;;  %1094 = vst [vmem:[#allocation8 + $0x30] sm:$0xff] %v1086_v23  ;;  %v1100_v50 = vadd.f32 %v1099_v62, %v2180_v57  ;;  %v1135_v20 = vmul.f32 %v2180_v57, %v75_v34 }
 0x153   :  { %1636 = shalt.err (!%p1633_p0)
}
 0x154   :  { %1263 = dma.vmem_to_hbm [thread:$0]  %s2213_s1, 1024, %s2268_s3, [#allocation9], %s1674_s15, %s1674_s15, %s1675_s16   ;;  %v85_v15 = vld [vmem:[#allocation5 + $0x130] sm:$0xff]  ;;  %v92_v40 = vld [vmem:[#allocation5 + $0x160] sm:$0xff]  ;;  %v1121_v58 = vadd.f32 %v1120_v48, %v1114_v43  ;;  %v1140_v11 = vadd.f32 %v1139_v1, %v2149_v59  ;;  %v1155_v21 = vmul.f32 %v2184_v53, %v83_v60  ;;  %v1160_v28 = vadd.f32 %v2172_v7, %v1153_v55  ;;  %v86_v3 = vld [vmem:[#allocation5 + $0x138] sm:$0xff] }
 0x155   :  { %v1101_v17 = vadd.f32 %v1100_v50, %v1086_v23  ;;  %v1136_v27 = vmul.f32 %v1086_v23, %v76_v42  ;;  %v1137_v36 = vmul.f32 %v2210_v18, %v77_v41  ;;  %v1174_v30 = vmul.f32 %v2153_v13, %v90_v6  ;;  %v93_v26 = vld [vmem:[#allocation5 + $0x168] sm:$0xff]  ;;  %v94_v25 = vld [vmem:[#allocation5 + $0x170] sm:$0xff]  ;;  %s1679_s3 = smov [#allocation7]  }
 0x156   :  { %v1122_v61 = vadd.f32 %v1121_v58, %v1115_v22  ;;  %v1141_v19 = vadd.f32 %v1140_v11, %v1134_v5  ;;  %v1156_v38 = vmul.f32 %v2180_v57, %v84_v46  ;;  %v1161_v10 = vadd.f32 %v1160_v28, %v2170_v45  ;;  %s1248_s27 = sshll.u32 %s1679_s3, 4  ;;  %s1249_s27 = int_to_ptr.vmem [resolvable:$true] %s1248_s27 }
 0x157   :  { %v1102_v59 = vadd.f32 %v1101_v17, %v2210_v18  ;;  %v1157_v16 = vmul.f32 %v1086_v23, %v85_v15  ;;  %v1176_v7 = vmul.f32 %v2184_v53, %v92_v40  ;;  %v1181_v24 = vadd.f32 %v1180_v39, %v1174_v30  ;;  %v95_v39 = vld [vmem:[#allocation5 + $0x178] sm:$0xff]  ;;  %s1645_s28 = scalar_lea.vmem %s1249_s27, 128  ;;  %p1650_p2 = scmp.lt.s32.totalorder %s1249_s27, %s1249_s27 }
 0x158   :  { %v1123_v35 = vadd.f32 %v1122_v61, %v1116_v52  ;;  %v1142_v54 = vadd.f32 %v1141_v19, %v1135_v20  ;;  %v1158_v32 = vmul.f32 %v2210_v18, %v86_v3  ;;  %v1162_v2 = vadd.f32 %v1161_v10, %v1155_v21  ;;  %p1646_p1 = scmp.ne.s32.totalorder %s1249_s27, %s1645_s28  ;;  %p1651_p3 = scmp.lt.s32.totalorder %s1645_s28, %s1645_s28 }
 0x159   :  { %v1103_v13 = vrot.slane %v1102_v59, 4  ;;  %v1177_v49 = vmul.f32 %v2180_v57, %v93_v26  ;;  %v1182_v8 = vadd.f32 %v1181_v24, %v2199_v51  ;;  %v1211_v56 = vadd.f32 %v2141_v12, %v1210_v63 }
 0x15a   :  { %v1124_v45 = vrot.slane %v1123_v35, 4  ;;  %v1143_v14 = vadd.f32 %v1142_v54, %v1136_v27  ;;  %v1163_v44 = vadd.f32 %v1162_v2, %v1156_v38  ;;  %v1178_v55 = vmul.f32 %v1086_v23, %v94_v25  ;;  %p1652_p4 = por %p1651_p3, %p1650_p2 }
 0x15b   :  { %v1104_v31 = vadd.f32 %v1103_v13, %v1102_v59  ;;  %v1183_v34 = vadd.f32 %v1182_v8, %v1176_v7  ;;  %v1279_v53 = vsel %vm2157_vm2, 1.0, %v1677_v0  ;;  %v1212_v9 = vadd.f32 %v1278_v4, %v1211_v56 }
 0x15c   :  { %v1125_v60 = vadd.f32 %v1124_v45, %v1123_v35  ;;  %v1144_v62 = vadd.f32 %v1143_v14, %v1137_v36  ;;  %v1164_v43 = vadd.f32 %v1163_v44, %v1157_v16  ;;  %v1280_v57 = vsel %vm2204_vm8, 1.0, %v1677_v0  ;;  %p1653_p5 = pnand %p1652_p4, %p1646_p1 }
 0x15d   :  { %v1105_v12 = vrot.slane %v1104_v31, 2  ;;  %v1184_v51 = vadd.f32 %v1183_v34, %v1177_v49  ;;  %v1213_v63 = vadd.f32 %v1279_v53, %v1212_v9  ;;  %v1223_v6 = vshrl.u32 %v1222_v47, 7 }
 0x15e   :  { %v1126_v42 = vrot.slane %v1125_v60, 2  ;;  %v1145_v23 = vrot.slane %v1144_v62, 4  ;;  %v1165_v41 = vadd.f32 %v1164_v43, %v1158_v32  ;;  %v1179_v29 = vmul.f32 %v2210_v18, %v95_v39 }
 0x15f   :  { %v1106_v22 = vadd.f32 %v1105_v12, %v1104_v31  ;;  %v1185_v48 = vadd.f32 %v1184_v51, %v1178_v55  ;;  %v1214_v5 = vadd.f32 %v1280_v57, %v1213_v63  ;;  %v1281_v33 = vsel %vm2195_vm7, 1.0, %v1677_v0 }
 0x160   :  { %v1127_v1 = vadd.f32 %v1126_v42, %v1125_v60  ;;  %v1146_v4 = vadd.f32 %v1145_v23, %v1144_v62  ;;  %v1166_v46 = vrot.slane %v1165_v41, 4  ;;  %vm1224_vm9 = vcmp.eq.s32.totalorder %v1223_v6, 0 }
 0x161   :  { %v1107_v50 = vrot.slane %v1106_v22, 1  ;;  %v1186_v52 = vadd.f32 %v1185_v48, %v1179_v29  ;;  %v1215_v20 = vadd.f32 %v1281_v33, %v1214_v5  ;;  %vm1226_vm10 = vcmp.eq.s32.totalorder %v1223_v6, 1 }
 0x162   :  { %v1128_v15 = vrot.slane %v1127_v1, 1  ;;  %v1147_v40 = vrot.slane %v1146_v4, 2  ;;  %v1167_v58 = vadd.f32 %v1166_v46, %v1165_v41  ;;  %vm1229_vm11 = vcmp.eq.s32.totalorder %v1223_v6, 2 }
 0x163   :  { %v1108_v47 = vadd.f32 %v1107_v50, %v1106_v22  ;;  %v1187_v11 = vrot.slane %v1186_v52, 4  ;;  %v1216_v21 = vrot.slane %v1215_v20, 4  ;;  %vm1232_vm12 = vcmp.eq.s32.totalorder %v1223_v6, 3 }
 0x164   :  { %v1129_v18 = vadd.f32 %v1128_v15, %v1127_v1  ;;  %v1148_v28 = vadd.f32 %v1147_v40, %v1146_v4  ;;  %v1168_v3 = vrot.slane %v1167_v58, 2  ;;  %vm1235_vm13 = vcmp.eq.s32.totalorder %v1223_v6, 4 }
 0x165   :  { %v1188_v17 = vadd.f32 %v1187_v11, %v1186_v52  ;;  %v1217_v27 = vadd.f32 %v1216_v21, %v1215_v20  ;;  %v1225_v37 = vsel %vm1224_vm9, %v1108_v47, 0.0  ;;  %vm1238_vm14 = vcmp.eq.s32.totalorder %v1223_v6, 5 }
 0x166   :  { %v1149_v36 = vrot.slane %v1148_v28, 1  ;;  %v1169_v30 = vadd.f32 %v1168_v3, %v1167_v58  ;;  %v1227_v0 = vsel %vm1226_vm10, %v1129_v18, 0.0 }
 0x167   :  { %v1189_v26 = vrot.slane %v1188_v17, 2  ;;  %v1218_v61 = vrot.slane %v1217_v27, 2  ;;  %v1228_v19 = vadd.f32 %v1227_v0, %v1225_v37 }
 0x168   :  { %v1150_v38 = vadd.f32 %v1149_v36, %v1148_v28  ;;  %v1170_v10 = vrot.slane %v1169_v30, 1 }
 0x169   :  { %v1190_v25 = vadd.f32 %v1189_v26, %v1188_v17  ;;  %v1219_v59 = vadd.f32 %v1218_v61, %v1217_v27 }
 0x16a   :  { %v1171_v16 = vadd.f32 %v1170_v10, %v1169_v30  ;;  %v1230_v7 = vsel %vm1229_vm11, %v1150_v38, 0.0 }
 0x16b   :  { %v1191_v24 = vrot.slane %v1190_v25, 1  ;;  %v1220_v35 = vrot.slane %v1219_v59, 1  ;;  %v1231_v54 = vadd.f32 %v1230_v7, %v1228_v19 }
 0x16c   :  { %v1233_v32 = vsel %vm1232_vm12, %v1171_v16, 0.0 }
 0x16d   :  { %v1192_v2 = vadd.f32 %v1191_v24, %v1190_v25  ;;  %v1221_v13 = vadd.f32 %v1220_v35, %v1219_v59  ;;  %v1234_v49 = vadd.f32 %v1233_v32, %v1231_v54 }
 0x16f   :  { %v1236_v8 = vsel %vm1235_vm13, %v1192_v2, 0.0  ;;  %v1239_v45 = vsel %vm1238_vm14, %v1221_v13, 0.0 }
 0x170   :  { %v1237_v56 = vadd.f32 %v1236_v8, %v1234_v49 }
 0x172   :  { %v1240_v14 = vadd.f32 %v1239_v45, %v1237_v56 }
 0x174   :  { %1241 = vst [vmem:[#allocation7] sm:$0xff] %v1240_v14 }
 0x175   :  { %1656 = shalt.err (!%p1653_p5)
}
 0x176   :  { %1251 = dma.vmem_to_hbm [thread:$0]  %s1249_s27, 128, %s2267_s2, [#allocation4]  }
 0x177   :  { %1669 = dma.done.wait [#allocation4], 128  }
 0x178   :  { %1670 = vsyncadd [#allocation4], 4294967168 }
 0x179   :  { %1671 = dma.done.wait [#allocation9], 1024  }
 0x17a   :  { %1672 = vsyncadd [#allocation9], 4294966272 }
 0x17b   :  { %1270 = vsyncpa [#allocation3], 1 }
 0x17c   :  { %1271 = vsyncpa [#allocation6], 1 }
 0x17d   :  { %1272 = vsyncpa [#allocation4], 1 }
 0x17e   :  { %1273 = vsyncpa [#allocation9], 1 }

</bundles_post_ra>
